<compile_context>
chip_gen: v5e
topology: v5e:2x2
jax: 0.10.0
libtpu: 0.0.40
codegen_flags: <defaults>
</compile_context>

<pallas_src>
from functools import partial

import jax
import jax.numpy as jnp
from jax.experimental import pallas as pl
from jax.experimental.pallas import tpu as pltpu


def bert_output_kernel(hs_ref, inp_ref, w_ref, bgb_ref, out_ref, *, eps):
    # MXU matmul, f32 accumulation.  Cast the activation tile to the weight's
    # (compute) dtype here, on VMEM, instead of a separate XLA cast over HBM.
    acc = jnp.dot(hs_ref[...].astype(w_ref.dtype), w_ref[...],
                  preferred_element_type=jnp.float32)

    # bias + residual (f32 epilogue).  bgb rows: 0=bias, 1=gamma, 2=beta.
    x = acc + bgb_ref[0:1, :] + inp_ref[...].astype(jnp.float32)

    # LayerNorm: two-pass statistics (the tile is already resident, so the
    # extra VPU pass is cheap and avoids E[x^2]-mean^2 cancellation).
    mean = jnp.mean(x, axis=-1, keepdims=True)
    xc = x - mean
    var = jnp.mean(xc * xc, axis=-1, keepdims=True)
    inv = jax.lax.rsqrt(var + eps)
    y = xc * inv * bgb_ref[1:2, :] + bgb_ref[2:3, :]
    out_ref[...] = y.astype(out_ref.dtype)


def _round_up(x, m):
    return (x + m - 1) // m * m


def prepare_bert_output_params(weight, bias, gamma, beta,
                               *, compute_dtype=jnp.bfloat16):
    """One-time per-layer preparation (hoisted out of the hot path).

    weight: torch nn.Linear layout [H, I] -> returns [I, H] in compute_dtype.
    bias/gamma/beta: [H] each       -> returns packed (3, H) f32.
    """
    w_t = weight.T.astype(compute_dtype)                       # [I, H]
    bgb = jnp.stack([bias, gamma, beta]).astype(jnp.float32)   # [3, H]
    return w_t, bgb


def bert_output(hidden_states, input_tensor, w_t, bgb,
                *, eps=1e-6, tm=512, out_dtype=None):
    """BertOutput forward.

    hidden_states: [B, S, I]   intermediate activations (any float dtype;
                               cast to the weight dtype inside the kernel)
    input_tensor : [B, S, H]   residual
    w_t          : [I, H]      prepared weight (see prepare_bert_output_params)
    bgb          : [3, H]      packed (bias, gamma, beta), f32
    """
    B, S, I = hidden_states.shape
    H = input_tensor.shape[-1]
    assert w_t.shape == (I, H), (w_t.shape, (I, H))
    assert bgb.shape == (3, H), (bgb.shape, (3, H))
    M = B * S
    if out_dtype is None:
        out_dtype = input_tensor.dtype

    # Free (contiguous) reshapes; no dtype change here -> no extra HBM pass.
    hs2 = hidden_states.reshape(M, I)
    in2 = input_tensor.reshape(M, H)

    tm_eff = min(tm, _round_up(M, 8))
    grid = (pl.cdiv(M, tm_eff),)

    # Explicit VMEM budget: single-buffered weight + params, double-buffered
    # activation/residual/output streams, plus f32 epilogue temporaries.
    bpe = lambda d: jnp.dtype(d).itemsize
    est = (I * H * bpe(w_t.dtype)
           + 3 * H * 4
           + 2 * tm_eff * (I * bpe(hs2.dtype)
                           + H * bpe(in2.dtype)
                           + H * bpe(out_dtype))
           + 4 * tm_eff * H * 4)
    vmem_limit = int(min(max(1.5 * est + (2 << 20), 16 << 20), 48 << 20))

    out = pl.pallas_call(
        partial(bert_output_kernel, eps=eps),
        out_shape=jax.ShapeDtypeStruct((M, H), out_dtype),
        grid_spec=pltpu.PrefetchScalarGridSpec(
            num_scalar_prefetch=0,
            grid=grid,
            in_specs=[
                # streamed per-tile operands (default double-buffered)
                pl.BlockSpec((tm_eff, I), lambda i: (i, 0)),   # hidden_states
                pl.BlockSpec((tm_eff, H), lambda i: (i, 0)),   # residual
                # grid-invariant operands: single-buffered (constant index_map)
                pl.BlockSpec((I, H), lambda i: (0, 0),
                             pipeline_mode=pl.Buffered(1)),    # weight
                pl.BlockSpec((3, H), lambda i: (0, 0),
                             pipeline_mode=pl.Buffered(1)),    # bias/gamma/beta
            ],
            out_specs=pl.BlockSpec((tm_eff, H), lambda i: (i, 0)),
        ),
        compiler_params=pltpu.CompilerParams(
            dimension_semantics=("parallel",),
            vmem_limit_bytes=vmem_limit),
    )(hs2, in2, w_t, bgb)

    return out.reshape(B, S, H)


def bert_output_ref(hidden_states, input_tensor, weight, bias, gamma, beta,
                    eps=1e-6, compute_dtype=jnp.bfloat16):
    """Pure-JAX reference using the same bf16 matmul / f32 LN numerics."""
    hs = hidden_states.astype(compute_dtype)
    w = weight.astype(compute_dtype)
    x = jnp.einsum('bsi,hi->bsh', hs, w, preferred_element_type=jnp.float32)
    x = x + bias.astype(jnp.float32) + input_tensor.astype(jnp.float32)
    mean = jnp.mean(x, axis=-1, keepdims=True)
    var = jnp.mean((x - mean) ** 2, axis=-1, keepdims=True)
    y = (x - mean) * jax.lax.rsqrt(var + eps) * gamma + beta
    return y.astype(input_tensor.dtype)


if __name__ == "__main__":
    # Small shapes consistent with the module (hidden < intermediate).
    B, S = 2, 8
    HIDDEN, INTER = 128, 256

    key = jax.random.PRNGKey(0)
    k1, k2, k3, k4 = jax.random.split(key, 4)

    hidden_states = jax.random.normal(k1, (B, S, INTER), dtype=jnp.float32)
    input_tensor = jax.random.normal(k2, (B, S, HIDDEN), dtype=jnp.float32)

    # nn.Linear(intermediate_size, hidden_size): weight [H, I], bias [H]
    weight = jax.random.normal(k3, (HIDDEN, INTER), dtype=jnp.float32) * 0.02
    bias = jax.random.normal(k4, (HIDDEN,), dtype=jnp.float32) * 0.02
    # LayerNorm params
    gamma = jnp.ones((HIDDEN,), dtype=jnp.float32)
    beta = jnp.zeros((HIDDEN,), dtype=jnp.float32)

    # One-time per-layer prep (transpose/cast weight, pack LN params).
    w_t, bgb = prepare_bert_output_params(weight, bias, gamma, beta)

    out = bert_output(hidden_states, input_tensor, w_t, bgb, eps=1e-6)
    out = jax.block_until_ready(out)

    ref = bert_output_ref(hidden_states, input_tensor, weight, bias, gamma,
                          beta, eps=1e-6)
    assert out.shape == (B, S, HIDDEN)
    assert jnp.allclose(out, ref, atol=2e-3, rtol=2e-3), "mismatch vs reference"

    print("KERNEL_OK")
</pallas_src>

<mosaic_0001>
module attributes {stable_mosaic.version = 11 : i64} {
  func.func @bert_output_kernel(%arg0: i32, %arg1: memref<16x256xf32, #tpu.memory_space<vmem>>, %arg2: memref<16x128xf32, #tpu.memory_space<vmem>>, %arg3: memref<256x128xbf16, #tpu.memory_space<vmem>>, %arg4: memref<3x128xf32, #tpu.memory_space<vmem>>, %arg5: memref<16x128xf32, #tpu.memory_space<vmem>>) attributes {dimension_semantics = [#tpu.dimension_semantics<parallel>], iteration_bounds = array<i64: 1>, scalar_prefetch = 0 : i64, scratch_operands = 0 : i64, tpu.core_type = #tpu.core_type<tc>, window_params = [{transform_indices = @transform_0, window_bounds = array<i64: 16, 256>}, {transform_indices = @transform_1, window_bounds = array<i64: 16, 128>}, {pipeline_mode = #tpu.pipeline_mode<synchronous>, transform_indices = @transform_2, window_bounds = array<i64: 256, 128>}, {pipeline_mode = #tpu.pipeline_mode<synchronous>, transform_indices = @transform_3, window_bounds = array<i64: 3, 128>}, {transform_indices = @transform_4, window_bounds = array<i64: 16, 128>}]} {
    %c0 = arith.constant 0 : index
    %c0_0 = arith.constant 0 : index
    %0 = vector.load %arg1[%c0, %c0_0] : memref<16x256xf32, #tpu.memory_space<vmem>>, vector<16x256xf32>
    %1 = arith.truncf %0 : vector<16x256xf32> to vector<16x256xbf16>
    %c0_1 = arith.constant 0 : index
    %c0_2 = arith.constant 0 : index
    %2 = vector.load %arg3[%c0_1, %c0_2] : memref<256x128xbf16, #tpu.memory_space<vmem>>, vector<256x128xbf16>
    %cst = arith.constant dense<0.000000e+00> : vector<16x128xf32>
    %3 = tpu.matmul %1, %2, %cst {dimension_numbers = #tpu.dot_dimension_numbers<[1], [0], [0], [1], [0, 0, 1, 1], [], []>} : vector<16x256xbf16>, vector<256x128xbf16>, vector<16x128xf32> -> vector<16x128xf32>
    %c0_3 = arith.constant 0 : index
    %c0_4 = arith.constant 0 : index
    %4 = vector.load %arg4[%c0_3, %c0_4] : memref<3x128xf32, #tpu.memory_space<vmem>>, vector<1x128xf32>
    %5 = vector.broadcast %4 : vector<1x128xf32> to vector<16x128xf32>
    %6 = arith.addf %3, %5 : vector<16x128xf32>
    %c0_5 = arith.constant 0 : index
    %c0_6 = arith.constant 0 : index
    %7 = vector.load %arg2[%c0_5, %c0_6] : memref<16x128xf32, #tpu.memory_space<vmem>>, vector<16x128xf32>
    %8 = arith.addf %6, %7 : vector<16x128xf32>
    %cst_7 = arith.constant dense<0.000000e+00> : vector<16xf32>
    %9 = vector.multi_reduction <add>, %8, %cst_7 [1] : vector<16x128xf32> to vector<16xf32>
    %10 = vector.shape_cast %9 : vector<16xf32> to vector<16x1xf32>
    %cst_8 = arith.constant 1.280000e+02 : f32
    %11 = vector.broadcast %cst_8 : f32 to vector<16x1xf32>
    %12 = arith.divf %10, %11 : vector<16x1xf32>
    %13 = vector.broadcast %12 : vector<16x1xf32> to vector<16x128xf32>
    %14 = arith.subf %8, %13 : vector<16x128xf32>
    %15 = arith.mulf %14, %14 : vector<16x128xf32>
    %cst_9 = arith.constant dense<0.000000e+00> : vector<16xf32>
    %16 = vector.multi_reduction <add>, %15, %cst_9 [1] : vector<16x128xf32> to vector<16xf32>
    %17 = vector.shape_cast %16 : vector<16xf32> to vector<16x1xf32>
    %cst_10 = arith.constant 1.280000e+02 : f32
    %18 = vector.broadcast %cst_10 : f32 to vector<16x1xf32>
    %19 = arith.divf %17, %18 : vector<16x1xf32>
    %cst_11 = arith.constant 9.99999997E-7 : f32
    %20 = vector.broadcast %cst_11 : f32 to vector<16x1xf32>
    %21 = arith.addf %19, %20 : vector<16x1xf32>
    %22 = math.rsqrt %21 : vector<16x1xf32>
    %23 = vector.broadcast %22 : vector<16x1xf32> to vector<16x128xf32>
    %24 = arith.mulf %14, %23 : vector<16x128xf32>
    %c1 = arith.constant 1 : index
    %c0_12 = arith.constant 0 : index
    %25 = vector.load %arg4[%c1, %c0_12] : memref<3x128xf32, #tpu.memory_space<vmem>>, vector<1x128xf32>
    %26 = vector.broadcast %25 : vector<1x128xf32> to vector<16x128xf32>
    %27 = arith.mulf %24, %26 : vector<16x128xf32>
    %c2 = arith.constant 2 : index
    %c0_13 = arith.constant 0 : index
    %28 = vector.load %arg4[%c2, %c0_13] : memref<3x128xf32, #tpu.memory_space<vmem>>, vector<1x128xf32>
    %29 = vector.broadcast %28 : vector<1x128xf32> to vector<16x128xf32>
    %30 = arith.addf %27, %29 : vector<16x128xf32>
    %c0_14 = arith.constant 0 : index
    %c0_15 = arith.constant 0 : index
    %31 = vector.load %arg5[%c0_14, %c0_15] : memref<16x128xf32, #tpu.memory_space<vmem>>, vector<16x128xf32>
    tpu.vector_store %arg5[%c0_14, %c0_15], %30 {strides = array<i32>} : memref<16x128xf32, #tpu.memory_space<vmem>>, vector<16x128xf32>,
    return
  }
  func.func @transform_0(%arg0: i32) -> (i32, i32) {
    %c0_i32 = arith.constant 0 : i32
    %c0_i32_0 = arith.constant 0 : i32
    return %arg0, %c0_i32 : i32, i32
  }
  func.func @transform_1(%arg0: i32) -> (i32, i32) {
    %c0_i32 = arith.constant 0 : i32
    %c0_i32_0 = arith.constant 0 : i32
    return %arg0, %c0_i32 : i32, i32
  }
  func.func @transform_2(%arg0: i32) -> (i32, i32) {
    %c0_i32 = arith.constant 0 : i32
    %c0_i32_0 = arith.constant 0 : i32
    %c0_i32_1 = arith.constant 0 : i32
    return %c0_i32, %c0_i32_0 : i32, i32
  }
  func.func @transform_3(%arg0: i32) -> (i32, i32) {
    %c0_i32 = arith.constant 0 : i32
    %c0_i32_0 = arith.constant 0 : i32
    %c0_i32_1 = arith.constant 0 : i32
    return %c0_i32, %c0_i32_0 : i32, i32
  }
  func.func @transform_4(%arg0: i32) -> (i32, i32) {
    %c0_i32 = arith.constant 0 : i32
    %c0_i32_0 = arith.constant 0 : i32
    return %arg0, %c0_i32 : i32, i32
  }
}

</mosaic_0001>

<bundles_post_ra>
// kernel: tpu_custom_call.1
= control target key start
LH: loop header
LB: loop body
LE: loop exit
PB: predicated region body
PF: predicated region fallthrough
CT: control target
= control target key end

     0   :  { %9 = vsyncpa [#allocation3], 0  ;;  %s612_s0 = inlined_call_operand.hbm [shape: f32[16,256], index: 0, kind: input, shape index: {}]   ;;  %s613_s1 = inlined_call_operand.hbm [shape: f32[16,128], index: 1, kind: input, shape index: {}]   ;;  %s614_s2 = inlined_call_operand.hbm [shape: bf16[256,128], index: 2, kind: input, shape index: {}]   ;;  %s615_s3 = inlined_call_operand.hbm [shape: f32[3,128], index: 3, kind: input, shape index: {}]   ;;  %s616_s4 = inlined_call_operand.hbm [shape: f32[16,128], index: 4, kind: output, shape index: {}]  }
   0x1   :  { %10 = vsyncpa [#allocation6], 0 }
   0x2   :  { %11 = vsyncpa [#allocation9], 0  ;;  %s30_s17 = sshll.u32 %s613_s1, 4  ;;  %s31_s17 = int_to_ptr.hbm [resolvable:$true] %s30_s17 }
   0x3   :  { %12 = vsyncpa [#allocation4], 0  ;;  %s554_s18 = smov [#allocation5]   ;;  %s17_s22 = sshll.u32 %s612_s0, 4  ;;  %s18_s22 = int_to_ptr.hbm [resolvable:$true] %s17_s22 }
   0x4   :  { %s32_s19 = sshll.u32 %s554_s18, 4  ;;  %s555_s23 = smov 128   ;;  %s33_s19 = int_to_ptr.vmem [resolvable:$true] %s32_s19 }
   0x5   :  { %s556_s24 = smov 8   ;;  %s557_s25 = smov [#allocation2]  }
   0x6   :  { %38 = dma.hbm_to_vmem [thread:$0]  %s31_s17, 256, %s33_s19, [#allocation6], %s555_s23, %s555_s23, %s556_s24  }
   0x7   :  { %s19_s26 = sshll.u32 %s557_s25, 4  ;;  %s558_s1 = smov 256   ;;  %s20_s26 = int_to_ptr.vmem [resolvable:$true] %s19_s26 }
   0x8   :  { %s559_s27 = smov 16   ;;  %s43_s30 = sshll.u32 %s614_s2, 4  ;;  %s44_s30 = int_to_ptr.hbm [resolvable:$true] %s43_s30 }
   0x9   :  { %25 = dma.hbm_to_vmem [thread:$0]  %s18_s22, 512, %s20_s26, [#allocation3], %s558_s1, %s558_s1, %s559_s27  }
   0xa   :  { %s560_s5 = smov [#allocation7]   ;;  %s57_s8 = sshll.u32 %s615_s3, 4  ;;  %s58_s8 = int_to_ptr.hbm [resolvable:$true] %s57_s8 }
   0xb   :  { %s45_s0 = sshll.u32 %s560_s5, 4  ;;  %s561_s9 = smov 64   ;;  %s46_s0 = int_to_ptr.vmem [resolvable:$true] %s45_s0 }
   0xc   :  { %s562_s10 = smov 4   ;;  %s563_s11 = smov [#allocation8]  }
   0xd   :  { %51 = dma.hbm_to_vmem [thread:$0]  %s44_s30, 2048, %s46_s0, [#allocation6], %s561_s9, %s561_s9, %s562_s10  }
   0xe   :  { %s59_s12 = sshll.u32 %s563_s11, 4  ;;  %s60_s12 = int_to_ptr.vmem [resolvable:$true] %s59_s12 }
   0xf   :  { %62 = dma.hbm_to_vmem [thread:$0]  %s58_s8, 64, %s60_s12, [#allocation9]  }
  0x10   :  { %546 = dma.done.wait [#allocation3], 512  }
  0x11   :  { %547 = vsyncadd [#allocation3], 4294966784 }
  0x12   :  { %548 = dma.done.wait [#allocation6], 2304  }
  0x13   :  { %549 = vsyncadd [#allocation6], 4294964992 }
  0x14   :  { %550 = dma.done.wait [#allocation9], 64  }
  0x15   :  { %551 = vsyncadd [#allocation9], 4294967232  ;;  %v396_v0 = vld [vmem:[#allocation7 + $0x38] sm:$0xff]  ;;  %v395_v2 = vld [vmem:[#allocation7 + $0x30] sm:$0xff]  ;;  %v564_v35 = vmov 128.0   ;;  %s565_s2 = smov [#allocation10]  }
  0x16   :  { %v404_v1 = vld [vmem:[#allocation7 + $0x78] sm:$0xff]  ;;  %215 = vmatpush.bf16.msra.mxu0 %v396_v0  ;;  %v403_v3 = vld [vmem:[#allocation7 + $0x70] sm:$0xff]  ;;  %v394_v4 = vld [vmem:[#allocation7 + $0x28] sm:$0xff]  ;;  %420 = vrcp.f32 %v564_v35  ;;  %s308_s3 = sshll.u32 %s565_s2, 4  ;;  %s310_s15 = sshll.u32 %s616_s4, 4  ;;  %s309_s3 = int_to_ptr.vmem [resolvable:$true] %s308_s3  ;;  %s311_s15 = int_to_ptr.hbm [resolvable:$true] %s310_s15 }
  0x17   :  { %229 = vmatpush.bf16.msra.mxu1 %v404_v1  ;;  %v402_v5 = vld [vmem:[#allocation7 + $0x68] sm:$0xff]  ;;  %v393_v6 = vld [vmem:[#allocation7 + $0x20] sm:$0xff]  ;;  %v392_v8 = vld [vmem:[#allocation7 + $0x18] sm:$0xff] }
  0x18   :  { %v401_v7 = vld [vmem:[#allocation7 + $0x60] sm:$0xff]  ;;  %v400_v9 = vld [vmem:[#allocation7 + $0x58] sm:$0xff]  ;;  %v391_v10 = vld [vmem:[#allocation7 + $0x10] sm:$0xff] }
  0x19   :  { %v399_v11 = vld [vmem:[#allocation7 + $0x50] sm:$0xff]  ;;  %v390_v12 = vld [vmem:[#allocation7 + $0x8] sm:$0xff]  ;;  %v389_v14 = vld [vmem:[#allocation7] sm:$0xff] }
  0x1a   :  { %216 = vmatpush.bf16.msra.mxu0 %v395_v2  ;;  %v398_v13 = vld [vmem:[#allocation7 + $0x48] sm:$0xff]  ;;  %v397_v15 = vld [vmem:[#allocation7 + $0x40] sm:$0xff]  ;;  %v79_v16 = vld [vmem:[#allocation2] sm:$0xff] }
  0x1b   :  { %230 = vmatpush.bf16.msra.mxu1 %v403_v3  ;;  %v81_v17 = vld [vmem:[#allocation2 + $0x10] sm:$0xff]  ;;  %v80_v18 = vld [vmem:[#allocation2 + $0x8] sm:$0xff]  ;;  %v82_v19 = vld [vmem:[#allocation2 + $0x18] sm:$0xff] }
  0x1c   :  { %v83_v20 = vpack.c.bf16 %v81_v17, %v79_v16  ;;  %v84_v21 = vpack.c.bf16 %v82_v19, %v80_v18  ;;  %v417_v22 = vld [vmem:[#allocation8] ss:$0 sm:$0xff]  ;;  %v243_v26 = vld [vmem:[#allocation5] sm:$0xff]  ;;  %v244_v32 = vld [vmem:[#allocation5 + $0x8] sm:$0xff]  ;;  %v421_v36 = vpop.eup %420 }
  0x1d   :  { %v252_v37 = vmul.f32 128.0, %v421_v36  ;;  %vm256_vm0 = vweird.f32 %v421_v36  ;;  %v418_v0 = vld [vmem:[#allocation8 + $0x1] ss:$0 sm:$0xff] }
  0x1e   :  { %217 = vmatpush.bf16.msra.mxu0 %v394_v4  ;;  %v419_v4 = vld [vmem:[#allocation8 + $0x2] ss:$0 sm:$0xff] }
  0x1f   :  { %231 = vmatpush.bf16.msra.mxu1 %v402_v5  ;;  %v253_v38 = vsub.f32 1.0, %v252_v37 }
  0x21   :  { %v254_v39 = vmul.f32 %v421_v36, %v253_v38 }
  0x22   :  { %218 = vmatpush.bf16.msra.mxu0 %v393_v6 }
  0x23   :  { %232 = vmatpush.bf16.msra.mxu1 %v401_v7  ;;  %v255_v40 = vadd.f32 %v421_v36, %v254_v39 }
  0x25   :  { %v257_v41 = vsel %vm256_vm0, %v421_v36, %v255_v40 }
  0x26   :  { %219 = vmatpush.bf16.msra.mxu0 %v392_v8 }
  0x27   :  { %233 = vmatpush.bf16.msra.mxu1 %v400_v9 }
  0x2a   :  { %220 = vmatpush.bf16.msra.mxu0 %v391_v10 }
  0x2b   :  { %234 = vmatpush.bf16.msra.mxu1 %v399_v11 }
  0x2e   :  { %221 = vmatpush.bf16.msra.mxu0 %v390_v12 }
  0x2f   :  { %235 = vmatpush.bf16.msra.mxu1 %v398_v13 }
  0x32   :  { %222 = vmatpush.bf16.msra.mxu0 %v389_v14 }
  0x33   :  { %236 = vmatpush.bf16.msra.mxu1 %v397_v15 }
  0x35   :  { %223 = vmatmul.bf16.vlgmr.msra.gmra.mxu0 %v83_v20 }
  0x36   :  { %237 = vmatmul.bf16.vlgmr.msra.gmra.mxu1 %v84_v21 }
  0xb2   :  { %v224_v23 = vpop.f32.mrf.mxu0 }
  0xb3   :  { %v238_v24 = vpop.f32.mrf.mxu1  ;;  %v225_v25 = vadd.f32 %v417_v22, %v224_v23 }
  0xb5   :  { %v239_v27 = vadd.f32 %v238_v24, %v225_v25 }
  0xb7   :  { %v245_v28 = vadd.f32 %v243_v26, %v239_v27 }
  0xb9   :  { %247 = vadd.xlane.f32.xlu0 %v245_v28 }
  0xba   :  { %v226_v29 = vpop.f32.mrf.mxu0 }
  0xbb   :  { %v227_v30 = vadd.f32 %v417_v22, %v226_v29  ;;  %v240_v31 = vpop.f32.mrf.mxu1 }
  0xbd   :  { %v241_v33 = vadd.f32 %v240_v31, %v227_v30 }
  0xbf   :  { %v246_v34 = vadd.f32 %v244_v32, %v241_v33 }
  0xc1   :  { %249 = vadd.xlane.f32.xlu0 %v246_v34 }
 0x12c   :  { %v248_v42 = vpop.xlane.xlu0 %247 }
 0x12d   :  { %v258_v43 = vmul.f32 %v257_v41, %v248_v42 }
 0x12f   :  { %v260_v44 = vsub.f32 %v245_v28, %v258_v43 }
 0x131   :  { %v262_v45 = vmul.f32 %v260_v44, %v260_v44 }
 0x133   :  { %264 = vadd.xlane.f32.xlu1 %v262_v45 }
 0x134   :  { %v250_v46 = vpop.xlane.xlu0 %249 }
 0x135   :  { %v259_v47 = vmul.f32 %v257_v41, %v250_v46 }
 0x137   :  { %v261_v48 = vsub.f32 %v246_v34, %v259_v47 }
 0x139   :  { %v263_v49 = vmul.f32 %v261_v48, %v261_v48 }
 0x13b   :  { %266 = vadd.xlane.f32.xlu1 %v263_v49 }
 0x1a6   :  { %v265_v50 = vpop.xlane.xlu1 %264 }
 0x1a7   :  { %v268_v51 = vmul.f32 %v265_v50, %v257_v41 }
 0x1a9   :  { %v270_v52 = vadd.f32 1e-06, %v268_v51 }
 0x1ab   :  { %422 = vrsqrt.f32 %v270_v52  ;;  %vm278_vm2 = vweird.f32 %v270_v52 }
 0x1ae   :  { %v267_v53 = vpop.xlane.xlu1 %266 }
 0x1af   :  { %v269_v54 = vmul.f32 %v267_v53, %v257_v41 }
 0x1b1   :  { %v423_v55 = vpop.eup %422  ;;  %v271_v56 = vadd.f32 1e-06, %v269_v54 }
 0x1b2   :  { %v273_v57 = vmul.f32 %v423_v55, %v270_v52  ;;  %vm279_vm1 = vweird.f32 %v423_v55 }
 0x1b3   :  { %424 = vrsqrt.f32 %v271_v56  ;;  %vm280_vm3 = vmor %vm278_vm2, %vm279_vm1  ;;  %vm288_vm5 = vweird.f32 %v271_v56 }
 0x1b4   :  { %v274_v58 = vmul.f32 %v423_v55, %v273_v57 }
 0x1b6   :  { %v275_v59 = vmul.f32 0.5, %v274_v58 }
 0x1b8   :  { %v276_v60 = vsub.f32 1.5, %v275_v59 }
 0x1b9   :  { %v425_v61 = vpop.eup %424 }
 0x1ba   :  { %v277_v62 = vmul.f32 %v423_v55, %v276_v60  ;;  %v283_v63 = vmul.f32 %v425_v61, %v271_v56  ;;  %vm289_vm4 = vweird.f32 %v425_v61 }
 0x1bb   :  { %vm290_vm6 = vmor %vm288_vm5, %vm289_vm4 }
 0x1bc   :  { %v281_v1 = vsel %vm280_vm3, %v423_v55, %v277_v62  ;;  %v284_v2 = vmul.f32 %v425_v61, %v283_v63 }
 0x1bd   :  { %v292_v3 = vmul.f32 %v281_v1, %v260_v44 }
 0x1be   :  { %v285_v5 = vmul.f32 0.5, %v284_v2 }
 0x1bf   :  { %v296_v6 = vmul.f32 %v418_v0, %v292_v3 }
 0x1c0   :  { %v286_v7 = vsub.f32 1.5, %v285_v5 }
 0x1c1   :  { %v300_v8 = vadd.f32 %v419_v4, %v296_v6 }
 0x1c2   :  { %v287_v9 = vmul.f32 %v425_v61, %v286_v7 }
 0x1c3   :  { %302 = vst [vmem:[#allocation10] sm:$0xff] %v300_v8 }
 0x1c4   :  { %v291_v10 = vsel %vm290_vm6, %v425_v61, %v287_v9 }
 0x1c5   :  { %v293_v11 = vmul.f32 %v291_v10, %v261_v48 }
 0x1c7   :  { %v297_v12 = vmul.f32 %v418_v0, %v293_v11 }
 0x1c9   :  { %v301_v13 = vadd.f32 %v419_v4, %v297_v12 }
 0x1cb   :  { %303 = vst [vmem:[#allocation10 + $0x8] sm:$0xff] %v301_v13 }
 0x1cc   :  { %316 = dma.vmem_to_hbm [thread:$0]  %s309_s3, 256, %s311_s15, [#allocation4], %s555_s23, %s555_s23, %s556_s24  }
 0x1cd   :  { %552 = dma.done.wait [#allocation4], 256  }
 0x1ce   :  { %553 = vsyncadd [#allocation4], 4294967040 }
 0x1cf   :  { %321 = vsyncpa [#allocation3], 1 }
 0x1d0   :  { %322 = vsyncpa [#allocation6], 1 }
 0x1d1   :  { %323 = vsyncpa [#allocation9], 1 }
 0x1d2   :  { %324 = vsyncpa [#allocation4], 1 }

</bundles_post_ra>
